<compile_context>
chip_gen: v7x
topology: tpu7x:2x2x1
jax: 0.10.0
libtpu: 0.0.40
codegen_flags: <defaults>
</compile_context>

<pallas_src>
import functools
import math

import jax
import jax.numpy as jnp
from jax.experimental import pallas as pl
from jax.experimental.pallas import tpu as pltpu


def _round_up(x, m):
    return ((x + m - 1) // m) * m


def _tq_cap():
    """Query-tile cap: 128 on v5e and older (4x128^2 MXU), 256 on v6e/v7x."""
    try:
        kind = jax.devices()[0].device_kind.lower()
    except Exception:
        return 128
    if any(g in kind for g in ("v2", "v3", "v4", "v5")):
        return 128
    return 256


def _vmem_limit_bytes():
    """Per-generation VMEM budget with headroom (~78% of physical capacity)."""
    cap = 128 * 1024 * 1024
    try:
        cap = int(pltpu.get_tpu_info().vmem_capacity_bytes)
    except Exception:
        pass
    return int(cap * 0.78)


def transformer_layer_kernel(x_ref, wq_ref, k_ref, v_ref,
                             w1_ref, b1_ref, w2_ref, b2_ref,
                             out_ref, attn_ref, *, s_actual):
    x_tile = x_ref[...]                                    # (tq, Dp) f32 (streamed)
    x_bf = x_tile.astype(jnp.bfloat16)

    # Q projection (1/sqrt(d_model) scale already folded into W_Q in the wrapper).
    q = jnp.dot(x_bf, wq_ref[...], preferred_element_type=jnp.float32)   # (tq, dip)
    q_bf = q.astype(jnp.bfloat16)

    # scores = q @ k^T via dot_general (contract on dim 1) — no VMEM transpose.
    scores = jax.lax.dot_general(
        q_bf, k_ref[...], dimension_numbers=(((1,), (1,)), ((), ())),
        preferred_element_type=jnp.float32)                # (tq, Sp) f32

    sp = scores.shape[1]
    if s_actual != sp:   # static at trace time: skip the mask when keys aren't padded
        key_ids = jax.lax.broadcasted_iota(jnp.int32, scores.shape, 1)
        scores = jnp.where(key_ids < s_actual, scores, -jnp.inf)

    m = jnp.max(scores, axis=-1, keepdims=True)
    p = jnp.exp(scores - m)
    # Exact reciprocal: stored attention rows sum to 1 (attn map is returned).
    attn = p * pl.reciprocal(jnp.sum(p, axis=-1, keepdims=True))
    attn_ref[...] = attn.astype(attn_ref.dtype)

    a = jnp.dot(attn.astype(jnp.bfloat16), v_ref[...],
                preferred_element_type=jnp.float32) + x_tile       # residual 1 (f32)

    # --- FFN (Linear -> ReLU -> [Dropout=id] -> Linear) --------------------
    h = jnp.dot(a.astype(jnp.bfloat16), w1_ref[...],
                preferred_element_type=jnp.float32) + b1_ref[...]
    h = jnp.maximum(h, 0.0).astype(jnp.bfloat16)
    ffn = jnp.dot(h, w2_ref[...], preferred_element_type=jnp.float32) + b2_ref[...]

    out_ref[...] = ffn + a                                         # residual 2 (f32)


def transformer_layer(x, params, d_model, d_internal, attn_dtype=jnp.float32):
    """x: (S, d_model) f32.  Returns (output (S, d_model), attn (S, S))."""
    S, D = x.shape
    assert D == d_model
    wq, wk, wv, w1, b1, w2, b2 = params                    # torch-layout f32 weights

    # Lane-dense padded shapes (exact: padded with zeros).
    Dp = _round_up(d_model, 128)
    dip = _round_up(d_internal, 128)
    Sp = _round_up(S, 8)
    cap = _tq_cap()
    tq = Sp if Sp <= cap else cap
    Sp = _round_up(Sp, tq)
    n_tiles = Sp // tq

    scale = 1.0 / math.sqrt(float(d_model))   # matches torch: / sqrt(d_model)

    def pad2(a, r, c):
        return jnp.pad(a, ((0, r - a.shape[0]), (0, c - a.shape[1])))

    x_p = pad2(x, Sp, Dp).astype(jnp.float32)
    x_bf = x_p.astype(jnp.bfloat16)

    # Pre-transpose to x @ W layout, pad, cast to bf16 (MXU-native).
    # The 1/sqrt(d_model) scale is folded into W_Q once here (in f32).
    wq_t = pad2(wq.T * scale, Dp, dip).astype(jnp.bfloat16)
    wk_t = pad2(wk.T, Dp, dip).astype(jnp.bfloat16)
    wv_t = pad2(wv.T, Dp, Dp).astype(jnp.bfloat16)
    w1_t = pad2(w1.T, Dp, dip).astype(jnp.bfloat16)
    w2_t = pad2(w2.T, dip, Dp).astype(jnp.bfloat16)
    b1_p = jnp.pad(b1, (0, dip - b1.shape[0])).reshape(1, dip).astype(jnp.float32)
    b2_p = jnp.pad(b2, (0, Dp - b2.shape[0])).reshape(1, Dp).astype(jnp.float32)

    # K/V projections hoisted out of the per-q-tile grid: computed exactly once
    # (bf16 operands, f32 accumulation), stored bf16 for the in-kernel MXU.
    k_p = jnp.dot(x_bf, wk_t, preferred_element_type=jnp.float32).astype(jnp.bfloat16)
    v_p = jnp.dot(x_bf, wv_t, preferred_element_type=jnp.float32).astype(jnp.bfloat16)

    kernel = functools.partial(transformer_layer_kernel, s_actual=S)

    def build_and_run(single_buffer_consts):
        def const_spec(shape):
            # Constant block index -> second pipeline buffer is pure VMEM waste.
            if single_buffer_consts:
                return pl.BlockSpec(shape, lambda i: (0, 0),
                                    pipeline_mode=pl.Buffered(1))
            return pl.BlockSpec(shape, lambda i: (0, 0))

        return pl.pallas_call(
            kernel,
            out_shape=(
                jax.ShapeDtypeStruct((Sp, Dp), jnp.float32),
                jax.ShapeDtypeStruct((Sp, Sp), attn_dtype),
            ),
            grid_spec=pltpu.PrefetchScalarGridSpec(
                num_scalar_prefetch=0,
                grid=(n_tiles,),
                in_specs=[
                    pl.BlockSpec((tq, Dp), lambda i: (i, 0)),   # x q-tile (streamed)
                    const_spec((Dp, dip)),                      # W_Q^T (scale folded)
                    const_spec((Sp, dip)),                      # K (precomputed, bf16)
                    const_spec((Sp, Dp)),                       # V (precomputed, bf16)
                    const_spec((Dp, dip)),                      # FFN W1^T
                    const_spec((1, dip)),                       # FFN b1
                    const_spec((dip, Dp)),                      # FFN W2^T
                    const_spec((1, Dp)),                        # FFN b2
                ],
                out_specs=(
                    pl.BlockSpec((tq, Dp), lambda i: (i, 0)),   # output q-tile
                    pl.BlockSpec((tq, Sp), lambda i: (i, 0)),   # attention q-tile
                ),
            ),
            compiler_params=pltpu.CompilerParams(
                # q-tiles are fully independent -> safe to split across v7x's 2 TCs.
                dimension_semantics=("parallel",),
                vmem_limit_bytes=_vmem_limit_bytes(),
            ),
        )(x_p, wq_t, k_p, v_p, w1_t, b1_p, w2_t, b2_p)

    try:
        out_p, attn_p = build_and_run(True)
    except Exception:
        # TODO(synk): pl.Buffered(1) rejected on this jax build; fall back to
        # default double-buffering for the constant-index inputs.
        out_p, attn_p = build_and_run(False)

    return out_p[:S, :d_model], attn_p[:S, :S]


def init_params(key, d_model, d_internal):
    """Deterministic synthetic params with torch Linear weight shapes."""
    ks = jax.random.split(key, 7)
    wq = jax.random.normal(ks[0], (d_internal, d_model), jnp.float32) * 0.1
    wk = jax.random.normal(ks[1], (d_internal, d_model), jnp.float32) * 0.1
    wv = jax.random.normal(ks[2], (d_model, d_model), jnp.float32) * 0.1
    w1 = jax.random.normal(ks[3], (d_internal, d_model), jnp.float32) * 0.1
    b1 = jax.random.normal(ks[4], (d_internal,), jnp.float32) * 0.1
    w2 = jax.random.normal(ks[5], (d_model, d_internal), jnp.float32) * 0.1
    b2 = jax.random.normal(ks[6], (d_model,), jnp.float32) * 0.1
    return (wq, wk, wv, w1, b1, w2, b2)


def reference(x, params, d_model):
    """Pure-JAX f32 reference mirroring the torch forward (eval mode)."""
    wq, wk, wv, w1, b1, w2, b2 = params
    q = x @ wq.T
    k = x @ wk.T
    v = x @ wv.T
    s = (q @ k.T) / jnp.sqrt(jnp.float32(d_model))
    attn = jax.nn.softmax(s, axis=-1)
    a = attn @ v + x
    h = jnp.maximum(a @ w1.T + b1, 0.0)
    return (h @ w2.T + b2) + a, attn


if __name__ == "__main__":
    S, d_model, d_internal = 8, 32, 16
    key = jax.random.PRNGKey(0)
    kx, kp = jax.random.split(key)

    x = jax.random.normal(kx, (S, d_model), jnp.float32)
    params = init_params(kp, d_model, d_internal)

    out, attn = transformer_layer(x, params, d_model, d_internal)
    jax.block_until_ready((out, attn))

    ref_out, ref_attn = reference(x, params, d_model)
    # bf16 MXU operands -> loosened (but tight-for-bf16) tolerances.
    assert jnp.allclose(out, ref_out, atol=5e-2, rtol=5e-2), "output mismatch"
    assert jnp.allclose(attn, ref_attn, atol=2e-2, rtol=2e-2), "attn mismatch"

    print("KERNEL_OK")
</pallas_src>

<mosaic_0001>
module attributes {stable_mosaic.version = 11 : i64} {
  func.func @transformer_layer_kernel(%arg0: i32, %arg1: memref<8x128xf32, #tpu.memory_space<vmem>>, %arg2: memref<128x128xbf16, #tpu.memory_space<vmem>>, %arg3: memref<8x128xbf16, #tpu.memory_space<vmem>>, %arg4: memref<8x128xbf16, #tpu.memory_space<vmem>>, %arg5: memref<128x128xbf16, #tpu.memory_space<vmem>>, %arg6: memref<1x128xf32, #tpu.memory_space<vmem>>, %arg7: memref<128x128xbf16, #tpu.memory_space<vmem>>, %arg8: memref<1x128xf32, #tpu.memory_space<vmem>>, %arg9: memref<8x128xf32, #tpu.memory_space<vmem>>, %arg10: memref<8x8xf32, #tpu.memory_space<vmem>>) attributes {dimension_semantics = [#tpu.dimension_semantics<parallel>], iteration_bounds = array<i64: 1>, scalar_prefetch = 0 : i64, scratch_operands = 0 : i64, tpu.core_type = #tpu.core_type<tc>, window_params = [{transform_indices = @transform_0, window_bounds = array<i64: 8, 128>}, {pipeline_mode = #tpu.pipeline_mode<synchronous>, transform_indices = @transform_1, window_bounds = array<i64: 128, 128>}, {pipeline_mode = #tpu.pipeline_mode<synchronous>, transform_indices = @transform_2, window_bounds = array<i64: 8, 128>}, {pipeline_mode = #tpu.pipeline_mode<synchronous>, transform_indices = @transform_3, window_bounds = array<i64: 8, 128>}, {pipeline_mode = #tpu.pipeline_mode<synchronous>, transform_indices = @transform_4, window_bounds = array<i64: 128, 128>}, {pipeline_mode = #tpu.pipeline_mode<synchronous>, transform_indices = @transform_5, window_bounds = array<i64: 1, 128>}, {pipeline_mode = #tpu.pipeline_mode<synchronous>, transform_indices = @transform_6, window_bounds = array<i64: 128, 128>}, {pipeline_mode = #tpu.pipeline_mode<synchronous>, transform_indices = @transform_7, window_bounds = array<i64: 1, 128>}, {transform_indices = @transform_8, window_bounds = array<i64: 8, 128>}, {transform_indices = @transform_9, window_bounds = array<i64: 8, 8>}]} {
    %c0 = arith.constant 0 : index
    %c0_0 = arith.constant 0 : index
    %0 = vector.load %arg1[%c0, %c0_0] : memref<8x128xf32, #tpu.memory_space<vmem>>, vector<8x128xf32>
    %1 = arith.truncf %0 : vector<8x128xf32> to vector<8x128xbf16>
    %c0_1 = arith.constant 0 : index
    %c0_2 = arith.constant 0 : index
    %2 = vector.load %arg2[%c0_1, %c0_2] : memref<128x128xbf16, #tpu.memory_space<vmem>>, vector<128x128xbf16>
    %cst = arith.constant dense<0.000000e+00> : vector<8x128xf32>
    %3 = tpu.matmul %1, %2, %cst {dimension_numbers = #tpu.dot_dimension_numbers<[1], [0], [0], [1], [0, 0, 1, 1], [], []>} : vector<8x128xbf16>, vector<128x128xbf16>, vector<8x128xf32> -> vector<8x128xf32>
    %4 = arith.truncf %3 : vector<8x128xf32> to vector<8x128xbf16>
    %c0_3 = arith.constant 0 : index
    %c0_4 = arith.constant 0 : index
    %5 = vector.load %arg3[%c0_3, %c0_4] : memref<8x128xbf16, #tpu.memory_space<vmem>>, vector<8x128xbf16>
    %cst_5 = arith.constant dense<0.000000e+00> : vector<8x8xf32>
    %6 = tpu.matmul %4, %5, %cst_5 {dimension_numbers = #tpu.dot_dimension_numbers<[1], [1], [0], [0], [0, 0, 1, 0], [], []>} : vector<8x128xbf16>, vector<8x128xbf16>, vector<8x8xf32> -> vector<8x8xf32>
    %cst_6 = arith.constant dense<0xFF800000> : vector<8xf32>
    %7 = vector.multi_reduction <maximumf>, %6, %cst_6 [1] : vector<8x8xf32> to vector<8xf32>
    %8 = vector.shape_cast %7 : vector<8xf32> to vector<8x1xf32>
    %9 = vector.broadcast %8 : vector<8x1xf32> to vector<8x8xf32>
    %10 = arith.subf %6, %9 : vector<8x8xf32>
    %11 = math.exp %10 : vector<8x8xf32>
    %cst_7 = arith.constant dense<0.000000e+00> : vector<8xf32>
    %12 = vector.multi_reduction <add>, %11, %cst_7 [1] : vector<8x8xf32> to vector<8xf32>
    %13 = vector.shape_cast %12 : vector<8xf32> to vector<8x1xf32>
    %14 = tpu.reciprocal %13 : vector<8x1xf32> -> vector<8x1xf32>
    %15 = vector.broadcast %14 : vector<8x1xf32> to vector<8x8xf32>
    %16 = arith.mulf %11, %15 : vector<8x8xf32>
    %c0_8 = arith.constant 0 : index
    %c0_9 = arith.constant 0 : index
    %17 = vector.load %arg10[%c0_8, %c0_9] : memref<8x8xf32, #tpu.memory_space<vmem>>, vector<8x8xf32>
    tpu.vector_store %arg10[%c0_8, %c0_9], %16 {strides = array<i32>} : memref<8x8xf32, #tpu.memory_space<vmem>>, vector<8x8xf32>,
    %18 = arith.truncf %16 : vector<8x8xf32> to vector<8x8xbf16>
    %c0_10 = arith.constant 0 : index
    %c0_11 = arith.constant 0 : index
    %19 = vector.load %arg4[%c0_10, %c0_11] : memref<8x128xbf16, #tpu.memory_space<vmem>>, vector<8x128xbf16>
    %cst_12 = arith.constant dense<0.000000e+00> : vector<8x128xf32>
    %20 = tpu.matmul %18, %19, %cst_12 {dimension_numbers = #tpu.dot_dimension_numbers<[1], [0], [0], [1], [0, 0, 1, 1], [], []>} : vector<8x8xbf16>, vector<8x128xbf16>, vector<8x128xf32> -> vector<8x128xf32>
    %21 = arith.addf %20, %0 : vector<8x128xf32>
    %22 = arith.truncf %21 : vector<8x128xf32> to vector<8x128xbf16>
    %c0_13 = arith.constant 0 : index
    %c0_14 = arith.constant 0 : index
    %23 = vector.load %arg5[%c0_13, %c0_14] : memref<128x128xbf16, #tpu.memory_space<vmem>>, vector<128x128xbf16>
    %cst_15 = arith.constant dense<0.000000e+00> : vector<8x128xf32>
    %24 = tpu.matmul %22, %23, %cst_15 {dimension_numbers = #tpu.dot_dimension_numbers<[1], [0], [0], [1], [0, 0, 1, 1], [], []>} : vector<8x128xbf16>, vector<128x128xbf16>, vector<8x128xf32> -> vector<8x128xf32>
    %c0_16 = arith.constant 0 : index
    %c0_17 = arith.constant 0 : index
    %25 = vector.load %arg6[%c0_16, %c0_17] : memref<1x128xf32, #tpu.memory_space<vmem>>, vector<1x128xf32>
    %26 = vector.broadcast %25 : vector<1x128xf32> to vector<8x128xf32>
    %27 = arith.addf %24, %26 : vector<8x128xf32>
    %cst_18 = arith.constant 0.000000e+00 : f32
    %28 = vector.broadcast %cst_18 : f32 to vector<8x128xf32>
    %29 = arith.maximumf %27, %28 : vector<8x128xf32>
    %30 = arith.truncf %29 : vector<8x128xf32> to vector<8x128xbf16>
    %c0_19 = arith.constant 0 : index
    %c0_20 = arith.constant 0 : index
    %31 = vector.load %arg7[%c0_19, %c0_20] : memref<128x128xbf16, #tpu.memory_space<vmem>>, vector<128x128xbf16>
    %cst_21 = arith.constant dense<0.000000e+00> : vector<8x128xf32>
    %32 = tpu.matmul %30, %31, %cst_21 {dimension_numbers = #tpu.dot_dimension_numbers<[1], [0], [0], [1], [0, 0, 1, 1], [], []>} : vector<8x128xbf16>, vector<128x128xbf16>, vector<8x128xf32> -> vector<8x128xf32>
    %c0_22 = arith.constant 0 : index
    %c0_23 = arith.constant 0 : index
    %33 = vector.load %arg8[%c0_22, %c0_23] : memref<1x128xf32, #tpu.memory_space<vmem>>, vector<1x128xf32>
    %34 = vector.broadcast %33 : vector<1x128xf32> to vector<8x128xf32>
    %35 = arith.addf %32, %34 : vector<8x128xf32>
    %36 = arith.addf %35, %21 : vector<8x128xf32>
    %c0_24 = arith.constant 0 : index
    %c0_25 = arith.constant 0 : index
    %37 = vector.load %arg9[%c0_24, %c0_25] : memref<8x128xf32, #tpu.memory_space<vmem>>, vector<8x128xf32>
    tpu.vector_store %arg9[%c0_24, %c0_25], %36 {strides = array<i32>} : memref<8x128xf32, #tpu.memory_space<vmem>>, vector<8x128xf32>,
    return
  }
  func.func @transform_0(%arg0: i32) -> (i32, i32) {
    %c0_i32 = arith.constant 0 : i32
    %c0_i32_0 = arith.constant 0 : i32
    return %arg0, %c0_i32 : i32, i32
  }
  func.func @transform_1(%arg0: i32) -> (i32, i32) {
    %c0_i32 = arith.constant 0 : i32
    %c0_i32_0 = arith.constant 0 : i32
    %c0_i32_1 = arith.constant 0 : i32
    return %c0_i32, %c0_i32_0 : i32, i32
  }
  func.func @transform_2(%arg0: i32) -> (i32, i32) {
    %c0_i32 = arith.constant 0 : i32
    %c0_i32_0 = arith.constant 0 : i32
    %c0_i32_1 = arith.constant 0 : i32
    return %c0_i32, %c0_i32_0 : i32, i32
  }
  func.func @transform_3(%arg0: i32) -> (i32, i32) {
    %c0_i32 = arith.constant 0 : i32
    %c0_i32_0 = arith.constant 0 : i32
    %c0_i32_1 = arith.constant 0 : i32
    return %c0_i32, %c0_i32_0 : i32, i32
  }
  func.func @transform_4(%arg0: i32) -> (i32, i32) {
    %c0_i32 = arith.constant 0 : i32
    %c0_i32_0 = arith.constant 0 : i32
    %c0_i32_1 = arith.constant 0 : i32
    return %c0_i32, %c0_i32_0 : i32, i32
  }
  func.func @transform_5(%arg0: i32) -> (i32, i32) {
    %c0_i32 = arith.constant 0 : i32
    %c0_i32_0 = arith.constant 0 : i32
    %c0_i32_1 = arith.constant 0 : i32
    return %c0_i32, %c0_i32_0 : i32, i32
  }
  func.func @transform_6(%arg0: i32) -> (i32, i32) {
    %c0_i32 = arith.constant 0 : i32
    %c0_i32_0 = arith.constant 0 : i32
    %c0_i32_1 = arith.constant 0 : i32
    return %c0_i32, %c0_i32_0 : i32, i32
  }
  func.func @transform_7(%arg0: i32) -> (i32, i32) {
    %c0_i32 = arith.constant 0 : i32
    %c0_i32_0 = arith.constant 0 : i32
    %c0_i32_1 = arith.constant 0 : i32
    return %c0_i32, %c0_i32_0 : i32, i32
  }
  func.func @transform_8(%arg0: i32) -> (i32, i32) {
    %c0_i32 = arith.constant 0 : i32
    %c0_i32_0 = arith.constant 0 : i32
    return %arg0, %c0_i32 : i32, i32
  }
  func.func @transform_9(%arg0: i32) -> (i32, i32) {
    %c0_i32 = arith.constant 0 : i32
    %c0_i32_0 = arith.constant 0 : i32
    return %arg0, %c0_i32 : i32, i32
  }
}

module attributes {stable_mosaic.version = 11 : i64} {
  func.func @transformer_layer_kernel(%arg0: i32, %arg1: memref<8x128xf32, #tpu.memory_space<vmem>>, %arg2: memref<128x128xbf16, #tpu.memory_space<vmem>>, %arg3: memref<8x128xbf16, #tpu.memory_space<vmem>>, %arg4: memref<8x128xbf16, #tpu.memory_space<vmem>>, %arg5: memref<128x128xbf16, #tpu.memory_space<vmem>>, %arg6: memref<1x128xf32, #tpu.memory_space<vmem>>, %arg7: memref<128x128xbf16, #tpu.memory_space<vmem>>, %arg8: memref<1x128xf32, #tpu.memory_space<vmem>>, %arg9: memref<8x128xf32, #tpu.memory_space<vmem>>, %arg10: memref<8x8xf32, #tpu.memory_space<vmem>>) attributes {dimension_semantics = [#tpu.dimension_semantics<parallel>], iteration_bounds = array<i64: 1>, scalar_prefetch = 0 : i64, scratch_operands = 0 : i64, tpu.core_type = #tpu.core_type<tc>, window_params = [{transform_indices = @transform_0, window_bounds = array<i64: 8, 128>}, {pipeline_mode = #tpu.pipeline_mode<synchronous>, transform_indices = @transform_1, window_bounds = array<i64: 128, 128>}, {pipeline_mode = #tpu.pipeline_mode<synchronous>, transform_indices = @transform_2, window_bounds = array<i64: 8, 128>}, {pipeline_mode = #tpu.pipeline_mode<synchronous>, transform_indices = @transform_3, window_bounds = array<i64: 8, 128>}, {pipeline_mode = #tpu.pipeline_mode<synchronous>, transform_indices = @transform_4, window_bounds = array<i64: 128, 128>}, {pipeline_mode = #tpu.pipeline_mode<synchronous>, transform_indices = @transform_5, window_bounds = array<i64: 1, 128>}, {pipeline_mode = #tpu.pipeline_mode<synchronous>, transform_indices = @transform_6, window_bounds = array<i64: 128, 128>}, {pipeline_mode = #tpu.pipeline_mode<synchronous>, transform_indices = @transform_7, window_bounds = array<i64: 1, 128>}, {transform_indices = @transform_8, window_bounds = array<i64: 8, 128>}, {transform_indices = @transform_9, window_bounds = array<i64: 8, 8>}]} {
    %c0 = arith.constant 0 : index
    %c0_0 = arith.constant 0 : index
    %0 = vector.load %arg1[%c0, %c0_0] : memref<8x128xf32, #tpu.memory_space<vmem>>, vector<8x128xf32>
    %1 = arith.truncf %0 : vector<8x128xf32> to vector<8x128xbf16>
    %c0_1 = arith.constant 0 : index
    %c0_2 = arith.constant 0 : index
    %2 = vector.load %arg2[%c0_1, %c0_2] : memref<128x128xbf16, #tpu.memory_space<vmem>>, vector<128x128xbf16>
    %cst = arith.constant dense<0.000000e+00> : vector<8x128xf32>
    %3 = tpu.matmul %1, %2, %cst {dimension_numbers = #tpu.dot_dimension_numbers<[1], [0], [0], [1], [0, 0, 1, 1], [], []>} : vector<8x128xbf16>, vector<128x128xbf16>, vector<8x128xf32> -> vector<8x128xf32>
    %4 = arith.truncf %3 : vector<8x128xf32> to vector<8x128xbf16>
    %c0_3 = arith.constant 0 : index
    %c0_4 = arith.constant 0 : index
    %5 = vector.load %arg3[%c0_3, %c0_4] : memref<8x128xbf16, #tpu.memory_space<vmem>>, vector<8x128xbf16>
    %cst_5 = arith.constant dense<0.000000e+00> : vector<8x8xf32>
    %6 = tpu.matmul %4, %5, %cst_5 {dimension_numbers = #tpu.dot_dimension_numbers<[1], [1], [0], [0], [0, 0, 1, 0], [], []>} : vector<8x128xbf16>, vector<8x128xbf16>, vector<8x8xf32> -> vector<8x8xf32>
    %cst_6 = arith.constant dense<0xFF800000> : vector<8xf32>
    %7 = vector.multi_reduction <maximumf>, %6, %cst_6 [1] : vector<8x8xf32> to vector<8xf32>
    %8 = vector.shape_cast %7 : vector<8xf32> to vector<8x1xf32>
    %9 = vector.broadcast %8 : vector<8x1xf32> to vector<8x8xf32>
    %10 = arith.subf %6, %9 : vector<8x8xf32>
    %11 = math.exp %10 : vector<8x8xf32>
    %cst_7 = arith.constant dense<0.000000e+00> : vector<8xf32>
    %12 = vector.multi_reduction <add>, %11, %cst_7 [1] : vector<8x8xf32> to vector<8xf32>
    %13 = vector.shape_cast %12 : vector<8xf32> to vector<8x1xf32>
    %14 = tpu.reciprocal %13 : vector<8x1xf32> -> vector<8x1xf32>
    %15 = vector.broadcast %14 : vector<8x1xf32> to vector<8x8xf32>
    %16 = arith.mulf %11, %15 : vector<8x8xf32>
    %c0_8 = arith.constant 0 : index
    %c0_9 = arith.constant 0 : index
    %17 = vector.load %arg10[%c0_8, %c0_9] : memref<8x8xf32, #tpu.memory_space<vmem>>, vector<8x8xf32>
    tpu.vector_store %arg10[%c0_8, %c0_9], %16 {strides = array<i32>} : memref<8x8xf32, #tpu.memory_space<vmem>>, vector<8x8xf32>,
    %18 = arith.truncf %16 : vector<8x8xf32> to vector<8x8xbf16>
    %c0_10 = arith.constant 0 : index
    %c0_11 = arith.constant 0 : index
    %19 = vector.load %arg4[%c0_10, %c0_11] : memref<8x128xbf16, #tpu.memory_space<vmem>>, vector<8x128xbf16>
    %cst_12 = arith.constant dense<0.000000e+00> : vector<8x128xf32>
    %20 = tpu.matmul %18, %19, %cst_12 {dimension_numbers = #tpu.dot_dimension_numbers<[1], [0], [0], [1], [0, 0, 1, 1], [], []>} : vector<8x8xbf16>, vector<8x128xbf16>, vector<8x128xf32> -> vector<8x128xf32>
    %21 = arith.addf %20, %0 : vector<8x128xf32>
    %22 = arith.truncf %21 : vector<8x128xf32> to vector<8x128xbf16>
    %c0_13 = arith.constant 0 : index
    %c0_14 = arith.constant 0 : index
    %23 = vector.load %arg5[%c0_13, %c0_14] : memref<128x128xbf16, #tpu.memory_space<vmem>>, vector<128x128xbf16>
    %cst_15 = arith.constant dense<0.000000e+00> : vector<8x128xf32>
    %24 = tpu.matmul %22, %23, %cst_15 {dimension_numbers = #tpu.dot_dimension_numbers<[1], [0], [0], [1], [0, 0, 1, 1], [], []>} : vector<8x128xbf16>, vector<128x128xbf16>, vector<8x128xf32> -> vector<8x128xf32>
    %c0_16 = arith.constant 0 : index
    %c0_17 = arith.constant 0 : index
    %25 = vector.load %arg6[%c0_16, %c0_17] : memref<1x128xf32, #tpu.memory_space<vmem>>, vector<1x128xf32>
    %26 = vector.broadcast %25 : vector<1x128xf32> to vector<8x128xf32>
    %27 = arith.addf %24, %26 : vector<8x128xf32>
    %cst_18 = arith.constant 0.000000e+00 : f32
    %28 = vector.broadcast %cst_18 : f32 to vector<8x128xf32>
    %29 = arith.maximumf %27, %28 : vector<8x128xf32>
    %30 = arith.truncf %29 : vector<8x128xf32> to vector<8x128xbf16>
    %c0_19 = arith.constant 0 : index
    %c0_20 = arith.constant 0 : index
    %31 = vector.load %arg7[%c0_19, %c0_20] : memref<128x128xbf16, #tpu.memory_space<vmem>>, vector<128x128xbf16>
    %cst_21 = arith.constant dense<0.000000e+00> : vector<8x128xf32>
    %32 = tpu.matmul %30, %31, %cst_21 {dimension_numbers = #tpu.dot_dimension_numbers<[1], [0], [0], [1], [0, 0, 1, 1], [], []>} : vector<8x128xbf16>, vector<128x128xbf16>, vector<8x128xf32> -> vector<8x128xf32>
    %c0_22 = arith.constant 0 : index
    %c0_23 = arith.constant 0 : index
    %33 = vector.load %arg8[%c0_22, %c0_23] : memref<1x128xf32, #tpu.memory_space<vmem>>, vector<1x128xf32>
    %34 = vector.broadcast %33 : vector<1x128xf32> to vector<8x128xf32>
    %35 = arith.addf %32, %34 : vector<8x128xf32>
    %36 = arith.addf %35, %21 : vector<8x128xf32>
    %c0_24 = arith.constant 0 : index
    %c0_25 = arith.constant 0 : index
    %37 = vector.load %arg9[%c0_24, %c0_25] : memref<8x128xf32, #tpu.memory_space<vmem>>, vector<8x128xf32>
    tpu.vector_store %arg9[%c0_24, %c0_25], %36 {strides = array<i32>} : memref<8x128xf32, #tpu.memory_space<vmem>>, vector<8x128xf32>,
    return
  }
  func.func @transform_0(%arg0: i32) -> (i32, i32) {
    %c0_i32 = arith.constant 0 : i32
    %c0_i32_0 = arith.constant 0 : i32
    return %arg0, %c0_i32 : i32, i32
  }
  func.func @transform_1(%arg0: i32) -> (i32, i32) {
    %c0_i32 = arith.constant 0 : i32
    %c0_i32_0 = arith.constant 0 : i32
    %c0_i32_1 = arith.constant 0 : i32
    return %c0_i32, %c0_i32_0 : i32, i32
  }
  func.func @transform_2(%arg0: i32) -> (i32, i32) {
    %c0_i32 = arith.constant 0 : i32
    %c0_i32_0 = arith.constant 0 : i32
    %c0_i32_1 = arith.constant 0 : i32
    return %c0_i32, %c0_i32_0 : i32, i32
  }
  func.func @transform_3(%arg0: i32) -> (i32, i32) {
    %c0_i32 = arith.constant 0 : i32
    %c0_i32_0 = arith.constant 0 : i32
    %c0_i32_1 = arith.constant 0 : i32
    return %c0_i32, %c0_i32_0 : i32, i32
  }
  func.func @transform_4(%arg0: i32) -> (i32, i32) {
    %c0_i32 = arith.constant 0 : i32
    %c0_i32_0 = arith.constant 0 : i32
    %c0_i32_1 = arith.constant 0 : i32
    return %c0_i32, %c0_i32_0 : i32, i32
  }
  func.func @transform_5(%arg0: i32) -> (i32, i32) {
    %c0_i32 = arith.constant 0 : i32
    %c0_i32_0 = arith.constant 0 : i32
    %c0_i32_1 = arith.constant 0 : i32
    return %c0_i32, %c0_i32_0 : i32, i32
  }
  func.func @transform_6(%arg0: i32) -> (i32, i32) {
    %c0_i32 = arith.constant 0 : i32
    %c0_i32_0 = arith.constant 0 : i32
    %c0_i32_1 = arith.constant 0 : i32
    return %c0_i32, %c0_i32_0 : i32, i32
  }
  func.func @transform_7(%arg0: i32) -> (i32, i32) {
    %c0_i32 = arith.constant 0 : i32
    %c0_i32_0 = arith.constant 0 : i32
    %c0_i32_1 = arith.constant 0 : i32
    return %c0_i32, %c0_i32_0 : i32, i32
  }
  func.func @transform_8(%arg0: i32) -> (i32, i32) {
    %c0_i32 = arith.constant 0 : i32
    %c0_i32_0 = arith.constant 0 : i32
    return %arg0, %c0_i32 : i32, i32
  }
  func.func @transform_9(%arg0: i32) -> (i32, i32) {
    %c0_i32 = arith.constant 0 : i32
    %c0_i32_0 = arith.constant 0 : i32
    return %arg0, %c0_i32 : i32, i32
  }
}

</mosaic_0001>

<bundles_post_ra>
// kernel: tpu_custom_call.1
= control target key start
LH: loop header
LB: loop body
LE: loop exit
PB: predicated region body
PF: predicated region fallthrough
CT: control target
= control target key end

     0   :  { %15 = vsyncpa [#allocation3], 0  ;;  %s1247_s0 = inlined_call_operand.hbm [shape: f32[8,128], index: 0, kind: input, shape index: {}]   ;;  %s1248_s1 = inlined_call_operand.hbm [shape: bf16[128,128], index: 1, kind: input, shape index: {}]   ;;  %s1249_s2 = inlined_call_operand.hbm [shape: bf16[8,128], index: 2, kind: input, shape index: {}]   ;;  %s1250_s3 = inlined_call_operand.hbm [shape: bf16[8,128], index: 3, kind: input, shape index: {}]   ;;  %s1251_s4 = inlined_call_operand.hbm [shape: bf16[128,128], index: 4, kind: input, shape index: {}]   ;;  %s1252_s5 = inlined_call_operand.hbm [shape: f32[1,128], index: 5, kind: input, shape index: {}]   ;;  %s1253_s6 = inlined_call_operand.hbm [shape: bf16[128,128], index: 6, kind: input, shape index: {}]   ;;  %s1254_s7 = inlined_call_operand.hbm [shape: f32[1,128], index: 7, kind: input, shape index: {}]   ;;  %s1255_s8 = inlined_call_operand.hbm [shape: f32[8,128], index: 8, kind: output, shape index: {0}]   ;;  %s1256_s9 = inlined_call_operand.hbm [shape: f32[8,8], index: 9, kind: output, shape index: {1}]  }
   0x1   :  { %16 = vsyncpa [#allocation6], 0 }
   0x2   :  { %17 = vsyncpa [#allocation9], 0 }
   0x3   :  { %18 = vsyncpa [#allocation12], 0 }
   0x4   :  { %19 = vsyncpa [#allocation15], 0 }
   0x5   :  { %20 = vsyncpa [#allocation4], 0 }
   0x6   :  { %21 = vsyncpa [#allocation18], 0  ;;  %s1009_s30 = smov [#allocation5]   ;;  %s775_s13 = scalar_lea.hbm %s1248_s1, 1024 }
   0x7   :  { %s37_s10 = sshll.u32 %s1009_s30, 4  ;;  %p776_p0 = scmp.ne.s32.totalorder %s1248_s1, %s775_s13  ;;  %s38_s10 = int_to_ptr.vmem [resolvable:$true] %s37_s10 }
   0x8   :  { %p779_p1 = scmp.lt.u32.totalorder %s775_s13, %s1248_s1 }
   0xa   :  { %p781_p2 = pnand %p779_p1, %p776_p0 }
   0xc   :  { %784 = shalt.err (!%p781_p2)
}
   0xd   :  { %s785_s18 = scalar_lea.vmem %s38_s10, 1024  ;;  %p790_p4 = scmp.lt.s32.totalorder %s38_s10, %s38_s10 }
   0xe   :  { %p786_p3 = scmp.ne.s32.totalorder %s38_s10, %s785_s18  ;;  %p791_p5 = scmp.lt.s32.totalorder %s785_s18, %s785_s18 }
  0x10   :  { %p792_p6 = por %p791_p5, %p790_p4 }
  0x12   :  { %p793_p7 = pnand %p792_p6, %p786_p3 }
  0x14   :  { %796 = shalt.err (!%p793_p7)
}
  0x15   :  { %s1010_s19 = smov 64   ;;  %s1011_s20 = smov 4  }
  0x16   :  { %43 = dma.hbm_to_vmem [thread:$0]  %s1248_s1, 1024, %s38_s10, [#allocation6], %s1010_s19, %s1010_s19, %s1011_s20  }
  0x17   :  { %s1012_s23 = smov [#allocation8]   ;;  %s1013_s25 = smov [#allocation11]  }
  0x18   :  { %s60_s24 = sshll.u32 %s1012_s23, 4  ;;  %s82_s26 = sshll.u32 %s1013_s25, 4  ;;  %s61_s24 = int_to_ptr.vmem [resolvable:$true] %s60_s24  ;;  %s83_s26 = int_to_ptr.vmem [resolvable:$true] %s82_s26 }
  0x19   :  { %s797_s29 = scalar_lea.hbm %s1250_s3, 64 }
  0x1a   :  { %p798_p8 = scmp.ne.s32.totalorder %s1250_s3, %s797_s29  ;;  %p801_p9 = scmp.lt.u32.totalorder %s797_s29, %s1250_s3 }
  0x1c   :  { %p803_p10 = pnand %p801_p9, %p798_p8 }
  0x1e   :  { %806 = shalt.err (!%p803_p10)
}
  0x1f   :  { %s807_s1 = scalar_lea.vmem %s61_s24, 64  ;;  %p812_p12 = scmp.lt.s32.totalorder %s61_s24, %s61_s24 }
  0x20   :  { %p808_p11 = scmp.ne.s32.totalorder %s61_s24, %s807_s1  ;;  %p813_p13 = scmp.lt.s32.totalorder %s807_s1, %s807_s1 }
  0x22   :  { %p814_p0 = por %p813_p13, %p812_p12 }
  0x24   :  { %p815_p1 = pnand %p814_p0, %p808_p11 }
  0x26   :  { %818 = shalt.err (!%p815_p1)
}
  0x27   :  { %63 = dma.hbm_to_vmem [thread:$0]  %s1250_s3, 64, %s61_s24, [#allocation9]  }
  0x28   :  { %s819_s17 = scalar_lea.hbm %s1252_s5, 16 }
  0x29   :  { %p820_p2 = scmp.ne.s32.totalorder %s1252_s5, %s819_s17  ;;  %p823_p3 = scmp.lt.u32.totalorder %s819_s17, %s1252_s5 }
  0x2b   :  { %p825_p4 = pnand %p823_p3, %p820_p2 }
  0x2d   :  { %828 = shalt.err (!%p825_p4)
}
  0x2e   :  { %s829_s25 = scalar_lea.vmem %s83_s26, 16  ;;  %s833_s27 = scalar_lea.vmem %s83_s26, 32 }
  0x2f   :  { %p830_p5 = scmp.ne.s32.totalorder %s83_s26, %s829_s25  ;;  %p834_p6 = scmp.lt.s32.totalorder %s83_s26, %s83_s26 }
  0x30   :  { %p835_p7 = scmp.lt.s32.totalorder %s833_s27, %s829_s25 }
  0x32   :  { %p836_p8 = por %p835_p7, %p834_p6 }
  0x34   :  { %p837_p9 = pnand %p836_p8, %p830_p5 }
  0x36   :  { %840 = shalt.err (!%p837_p9)
}
  0x37   :  { %85 = dma.hbm_to_vmem [thread:$0]  %s1252_s5, 16, %s83_s26, [#allocation12]  }
  0x38   :  { %s1014_s28 = smov [#allocation2]   ;;  %s1015_s30 = smov [#allocation7]  }
  0x39   :  { %s28_s29 = sshll.u32 %s1014_s28, 4  ;;  %s50_s11 = sshll.u32 %s1015_s30, 4  ;;  %s29_s29 = int_to_ptr.vmem [resolvable:$true] %s28_s29  ;;  %s51_s11 = int_to_ptr.vmem [resolvable:$true] %s50_s11 }
  0x3a   :  { %s841_s1 = scalar_lea.hbm %s1247_s0, 128 }
  0x3b   :  { %p842_p10 = scmp.ne.s32.totalorder %s1247_s0, %s841_s1  ;;  %p845_p11 = scmp.lt.u32.totalorder %s841_s1, %s1247_s0 }
  0x3d   :  { %p847_p12 = pnand %p845_p11, %p842_p10 }
  0x3f   :  { %850 = shalt.err (!%p847_p12)
}
  0x40   :  { %s851_s5 = scalar_lea.vmem %s29_s29, 128  ;;  %p856_p0 = scmp.lt.s32.totalorder %s29_s29, %s29_s29 }
  0x41   :  { %p852_p13 = scmp.ne.s32.totalorder %s29_s29, %s851_s5  ;;  %p857_p1 = scmp.lt.s32.totalorder %s851_s5, %s851_s5 }
  0x43   :  { %p858_p2 = por %p857_p1, %p856_p0 }
  0x45   :  { %p859_p3 = pnand %p858_p2, %p852_p13 }
  0x47   :  { %862 = shalt.err (!%p859_p3)
}
  0x48   :  { %31 = dma.hbm_to_vmem [thread:$0]  %s1247_s0, 128, %s29_s29, [#allocation3]  }
  0x49   :  { %s863_s22 = scalar_lea.hbm %s1249_s2, 64 }
  0x4a   :  { %p864_p4 = scmp.ne.s32.totalorder %s1249_s2, %s863_s22  ;;  %p867_p5 = scmp.lt.u32.totalorder %s863_s22, %s1249_s2 }
  0x4c   :  { %p869_p6 = pnand %p867_p5, %p864_p4 }
  0x4e   :  { %872 = shalt.err (!%p869_p6)
}
  0x4f   :  { %s873_s24 = scalar_lea.vmem %s51_s11, 64  ;;  %p878_p8 = scmp.lt.s32.totalorder %s51_s11, %s51_s11 }
  0x50   :  { %p874_p7 = scmp.ne.s32.totalorder %s51_s11, %s873_s24  ;;  %p879_p9 = scmp.lt.s32.totalorder %s873_s24, %s873_s24 }
  0x52   :  { %p880_p10 = por %p879_p9, %p878_p8 }
  0x54   :  { %p881_p11 = pnand %p880_p10, %p874_p7 }
  0x56   :  { %884 = shalt.err (!%p881_p11)
}
  0x57   :  { %53 = dma.hbm_to_vmem [thread:$0]  %s1249_s2, 64, %s51_s11, [#allocation6]  }
  0x58   :  { %s1016_s29 = smov [#allocation10]   ;;  %s1017_s12 = smov [#allocation13]  }
  0x59   :  { %s69_s30 = sshll.u32 %s1016_s29, 4  ;;  %s91_s13 = sshll.u32 %s1017_s12, 4  ;;  %s70_s30 = int_to_ptr.vmem [resolvable:$true] %s69_s30  ;;  %s92_s13 = int_to_ptr.vmem [resolvable:$true] %s91_s13 }
  0x5a   :  { %s885_s14 = scalar_lea.hbm %s1251_s4, 1024 }
  0x5b   :  { %p886_p12 = scmp.ne.s32.totalorder %s1251_s4, %s885_s14  ;;  %p889_p13 = scmp.lt.u32.totalorder %s885_s14, %s1251_s4 }
  0x5d   :  { %p891_p0 = pnand %p889_p13, %p886_p12 }
  0x5f   :  { %894 = shalt.err (!%p891_p0)
}
  0x60   :  { %s895_s2 = scalar_lea.vmem %s70_s30, 1024  ;;  %p900_p2 = scmp.lt.s32.totalorder %s70_s30, %s70_s30 }
  0x61   :  { %p896_p1 = scmp.ne.s32.totalorder %s70_s30, %s895_s2  ;;  %p901_p3 = scmp.lt.s32.totalorder %s895_s2, %s895_s2 }
  0x63   :  { %p902_p4 = por %p901_p3, %p900_p2 }
  0x65   :  { %p903_p5 = pnand %p902_p4, %p896_p1 }
  0x67   :  { %906 = shalt.err (!%p903_p5)
}
  0x68   :  { %75 = dma.hbm_to_vmem [thread:$0]  %s1251_s4, 1024, %s70_s30, [#allocation9], %s1010_s19, %s1010_s19, %s1011_s20  }
  0x69   :  { %s907_s22 = scalar_lea.hbm %s1253_s6, 1024 }
  0x6a   :  { %p908_p6 = scmp.ne.s32.totalorder %s1253_s6, %s907_s22  ;;  %p911_p7 = scmp.lt.u32.totalorder %s907_s22, %s1253_s6 }
  0x6c   :  { %p913_p8 = pnand %p911_p7, %p908_p6 }
  0x6e   :  { %916 = shalt.err (!%p913_p8)
}
  0x6f   :  { %s917_s24 = scalar_lea.vmem %s92_s13, 1024  ;;  %p922_p10 = scmp.lt.s32.totalorder %s92_s13, %s92_s13 }
  0x70   :  { %p918_p9 = scmp.ne.s32.totalorder %s92_s13, %s917_s24  ;;  %p923_p11 = scmp.lt.s32.totalorder %s917_s24, %s917_s24 }
  0x72   :  { %p924_p12 = por %p923_p11, %p922_p10 }
  0x74   :  { %p925_p13 = pnand %p924_p12, %p918_p9 }
  0x76   :  { %928 = shalt.err (!%p925_p13)
}
  0x77   :  { %97 = dma.hbm_to_vmem [thread:$0]  %s1253_s6, 1024, %s92_s13, [#allocation12], %s1010_s19, %s1010_s19, %s1011_s20  }
  0x78   :  { %s1018_s28 = smov [#allocation14]   ;;  %s929_s1 = scalar_lea.hbm %s1254_s7, 16 }
  0x79   :  { %s104_s29 = sshll.u32 %s1018_s28, 4  ;;  %p930_p0 = scmp.ne.s32.totalorder %s1254_s7, %s929_s1  ;;  %s105_s29 = int_to_ptr.vmem [resolvable:$true] %s104_s29 }
  0x7a   :  { %p933_p1 = scmp.lt.u32.totalorder %s929_s1, %s1254_s7 }
  0x7c   :  { %p935_p2 = pnand %p933_p1, %p930_p0 }
  0x7e   :  { %938 = shalt.err (!%p935_p2)
}
  0x7f   :  { %s939_s5 = scalar_lea.vmem %s105_s29, 16  ;;  %s943_s6 = scalar_lea.vmem %s105_s29, 32 }
  0x80   :  { %p940_p3 = scmp.ne.s32.totalorder %s105_s29, %s939_s5  ;;  %p944_p4 = scmp.lt.s32.totalorder %s105_s29, %s105_s29 }
  0x81   :  { %p945_p5 = scmp.lt.s32.totalorder %s943_s6, %s939_s5 }
  0x83   :  { %p946_p6 = por %p945_p5, %p944_p4 }
  0x85   :  { %p947_p7 = pnand %p946_p6, %p940_p3 }
  0x87   :  { %950 = shalt.err (!%p947_p7)
}
  0x88   :  { %107 = dma.hbm_to_vmem [thread:$0]  %s1254_s7, 16, %s105_s29, [#allocation15]  }
  0x89   :  { %995 = dma.done.wait [#allocation3], 128  }
  0x8a   :  { %996 = vsyncadd [#allocation3], 4294967168 }
  0x8b   :  { %997 = dma.done.wait [#allocation6], 1088  }
  0x8c   :  { %998 = vsyncadd [#allocation6], 4294966208 }
  0x8d   :  { %999 = dma.done.wait [#allocation9], 1088  }
  0x8e   :  { %1000 = vsyncadd [#allocation9], 4294966208 }
  0x8f   :  { %1001 = dma.done.wait [#allocation12], 1040  }
  0x90   :  { %1002 = vsyncadd [#allocation12], 4294966256 }
  0x91   :  { %1003 = dma.done.wait [#allocation15], 16  }
  0x92   :  { %1004 = vsyncadd [#allocation15], 4294967280  ;;  %v1019_v0 = vmov 0.0   ;;  %vm1020_vm0 = vmmov 0   ;;  %v747_v1 = vld [vmem:[#allocation5] sm:$0xff]   ;;  %v748_v2 = vld [vmem:[#allocation5 + $0x8] sm:$0xff]  }
  0x93   :  { %661 = vmatprep.subr.bf16.mxu0 %v1019_v0  ;;  %677 = vmatprep.mubr.msk.bf16.mxu0 %vm1020_vm0, %v1019_v0  ;;  %v749_v3 = vld [vmem:[#allocation5 + $0x10] sm:$0xff]   ;;  %v750_v4 = vld [vmem:[#allocation5 + $0x18] sm:$0xff]   ;;  %v240_v5 = vld [vmem:[#allocation7] sm:$0xf]  ;;  %vm281_vm1 = vcmask 64512   ;;  %vm299_vm2 = vcmask 1043456  }
  0x94   :  { %681 = vmatprep.subr.bf16.mxu1 %v1019_v0  ;;  %683 = vmatprep.mubr.msk.bf16.mxu1 %vm1020_vm0, %v1019_v0  ;;  %v751_v6 = vld [vmem:[#allocation5 + $0x20] sm:$0xff]   ;;  %v752_v7 = vld [vmem:[#allocation5 + $0x28] sm:$0xff]   ;;  %v753_v8 = vld [vmem:[#allocation5 + $0x30] sm:$0xff]   ;;  %s1021_s7 = smov [#allocation17]  }
  0x95   :  { %662 = vmatpush3.bf16.msra.mxu0 %v747_v1  ;;  %682 = vmatpush3.bf16.xpose.msra.mxu1 %v240_v5  ;;  %v754_v9 = vld [vmem:[#allocation5 + $0x38] sm:$0xff]   ;;  %v295_v27 = vld [vmem:[#allocation8] sm:$0xf]  ;;  %v755_v32 = vld [vmem:[#allocation10] sm:$0xff]   ;;  %s586_s13 = sshll.u32 %s1021_s7, 4  ;;  %s587_s13 = int_to_ptr.vmem [resolvable:$true] %s586_s13 }
  0x96   :  { %663 = vmatprep.subr.bf16.mxu0 %v1019_v0  ;;  %687 = vmatprep.subr.bf16.mxu1 %v1019_v0  ;;  %v1191_v10 = vld [vmem:[#allocation2] sm:$0xff]  ;;  %v301_v28 = vsel %vm299_vm2, %v295_v27, 0  ;;  %v756_v34 = vld [vmem:[#allocation10 + $0x8] sm:$0xff]   ;;  %v758_v36 = vld [vmem:[#allocation10 + $0x18] sm:$0xff]   ;;  %s951_s26 = scalar_lea.vmem %s587_s13, 128  ;;  %p956_p9 = scmp.lt.s32.totalorder %s587_s13, %s587_s13 }
  0x97   :  { %v134_v11 = vpack.c.bf16 %v1191_v10, %v1191_v10  ;;  %v757_v35 = vld [vmem:[#allocation10 + $0x10] sm:$0xff]   ;;  %v759_v37 = vld [vmem:[#allocation10 + $0x20] sm:$0xff]   ;;  %v760_v38 = vld [vmem:[#allocation10 + $0x28] sm:$0xff]   ;;  %p952_p8 = scmp.ne.s32.totalorder %s587_s13, %s951_s26  ;;  %p957_p10 = scmp.lt.s32.totalorder %s951_s26, %s951_s26 }
  0x98   :  { %v761_v39 = vld [vmem:[#allocation10 + $0x30] sm:$0xff]   ;;  %v762_v40 = vld [vmem:[#allocation10 + $0x38] sm:$0xff]   ;;  %v763_v41 = vld [vmem:[#allocation13] sm:$0xff]  }
  0x99   :  { %664 = vmatpush3.bf16.msra.mxu0 %v748_v2  ;;  %v764_v42 = vld [vmem:[#allocation13 + $0x8] sm:$0xff]   ;;  %v765_v43 = vld [vmem:[#allocation13 + $0x10] sm:$0xff]   ;;  %v766_v44 = vld [vmem:[#allocation13 + $0x18] sm:$0xff]   ;;  %p958_p11 = por %p957_p10, %p956_p9 }
  0x9a   :  { %665 = vmatprep.subr.bf16.mxu0 %v1019_v0  ;;  %v767_v45 = vld [vmem:[#allocation13 + $0x20] sm:$0xff]   ;;  %v768_v46 = vld [vmem:[#allocation13 + $0x28] sm:$0xff]   ;;  %v769_v53 = vld [vmem:[#allocation13 + $0x30] sm:$0xff]  }
  0x9b   :  { %v770_v54 = vld [vmem:[#allocation13 + $0x38] sm:$0xff]   ;;  %p959_p12 = pnand %p958_p11, %p952_p8 }
  0x9c   :  { %v612_v55 = vld [vmem:[#allocation11] ss:$0 sm:$0xff] }
  0x9d   :  { %666 = vmatpush3.bf16.msra.mxu0 %v749_v3 }
  0x9e   :  { %667 = vmatprep.subr.bf16.mxu0 %v1019_v0 }
  0xa1   :  { %668 = vmatpush3.bf16.msra.mxu0 %v750_v4 }
  0xa2   :  { %669 = vmatprep.subr.bf16.mxu0 %v1019_v0 }
  0xa5   :  { %670 = vmatpush3.bf16.msra.mxu0 %v751_v6 }
  0xa6   :  { %671 = vmatprep.subr.bf16.mxu0 %v1019_v0 }
  0xa9   :  { %672 = vmatpush3.bf16.msra.mxu0 %v752_v7 }
  0xaa   :  { %673 = vmatprep.subr.bf16.mxu0 %v1019_v0 }
  0xad   :  { %674 = vmatpush3.bf16.msra.mxu0 %v753_v8 }
  0xae   :  { %675 = vmatprep.subr.bf16.mxu0 %v1019_v0 }
  0xb1   :  { %676 = vmatpush3.bf16.msra.mxu0 %v754_v9 }
  0xb2   :  { %713 = vmatprep.subr.bf16.mxu0 %v1019_v0 }
  0xb4   :  { %678 = vmatmul.mubr.bf16.vlgmr.msra.gmra.mrb[0].mxu0 %v134_v11 }
  0xb5   :  { %729 = vmatprep.mubr.msk.bf16.mxu0 %vm1020_vm0, %v1019_v0  ;;  %714 = vmatpush3.bf16.msra.mxu0 %v763_v41 }
  0xb6   :  { %715 = vmatprep.subr.bf16.mxu0 %v1019_v0 }
  0xb9   :  { %716 = vmatpush3.bf16.msra.mxu0 %v764_v42 }
  0xba   :  { %717 = vmatprep.subr.bf16.mxu0 %v1019_v0 }
  0xbd   :  { %718 = vmatpush3.bf16.msra.mxu0 %v765_v43 }
  0xbe   :  { %719 = vmatprep.subr.bf16.mxu0 %v1019_v0 }
  0xc1   :  { %720 = vmatpush3.bf16.msra.mxu0 %v766_v44 }
  0xc2   :  { %721 = vmatprep.subr.bf16.mxu0 %v1019_v0 }
  0xc5   :  { %722 = vmatpush3.bf16.msra.mxu0 %v767_v45 }
  0xc6   :  { %723 = vmatprep.subr.bf16.mxu0 %v1019_v0 }
  0xc9   :  { %724 = vmatpush3.bf16.msra.mxu0 %v768_v46 }
  0xca   :  { %725 = vmatprep.subr.bf16.mxu0 %v1019_v0 }
  0xcd   :  { %726 = vmatpush3.bf16.msra.mxu0 %v769_v53 }
  0xce   :  { %727 = vmatprep.subr.bf16.mxu0 %v1019_v0 }
  0xd1   :  { %728 = vmatpush3.bf16.msra.mxu0 %v770_v54 }
 0x187   :  { %v233_v12 = vpop.f32.mrb[0].mxu0 }
 0x188   :  { %v239_v13 = vpack.c.bf16 %v233_v12, %v233_v12  ;;  %v679_v14 = vpop.f32.mrb[1].mxu0 }
 0x189   :  { %v236_v15 = vpop.f32.mrb[2].mxu0 }
 0x18a   :  { %v680_v16 = vpop.f32.mrb[3].mxu0  ;;  %684 = vmatmul.mubr.bf16.vlgmr.msra.gmra.mrb[0].mxu1 %v239_v13 }
 0x18b   :  { %689 = vmatprep.mubr.msk.bf16.mxu1 %vm1020_vm0, %v1019_v0  ;;  %688 = vmatpush3.bf16.msra.mxu1 %v301_v28 }
 0x18c   :  { %693 = vmatprep.subr.bf16.mxu1 %v1019_v0 }
 0x25d   :  { %v275_v17 = vpop.f32.mrb[0].mxu1 }
 0x25e   :  { %v685_v18 = vpop.f32.mrb[1].mxu1  ;;  %v282_v19 = vsel %vm281_vm1, %v275_v17, -inf }
 0x25f   :  { %283 = vmax.xlane.f32.xlu0 %v282_v19  ;;  %v278_v20 = vpop.f32.mrb[2].mxu1 }
 0x260   :  { %v686_v21 = vpop.f32.mrb[3].mxu1 }
 0x2ec   :  { %v284_v22 = vpop.xlane.xlu0 %283 }
 0x2ed   :  { %v285_v23 = vsub.f32 %v275_v17, %v284_v22 }
 0x2ef   :  { %v286_v24 = vmul.f32 1.442695, %v285_v23 }
 0x2f1   :  { %771 = vpow2.f32 %v286_v24 }
 0x2fb   :  { %v772_v25 = vpop.eup %771 }
 0x2fc   :  { %v288_v26 = vsel %vm281_vm1, %v772_v25, 0.0 }
 0x2fd   :  { %289 = vadd.xlane.f32.xlu0 %v288_v26 }
 0x38a   :  { %v290_v29 = vpop.xlane.xlu0 %289 }
 0x38b   :  { %773 = vrcp.f32 %v290_v29 }
 0x395   :  { %v774_v30 = vpop.eup %773 }
 0x396   :  { %v292_v31 = vmul.f32 %v774_v30, %v772_v25 }
 0x398   :  { %293 = vst.msk [vmem:[#allocation17] sm:$0xff] %vm281_vm1, %v292_v31  ;;  %v294_v33 = vpack.c.bf16 %v292_v31, %v292_v31 }
 0x39a   :  { %690 = vmatmul.mubr.msk.bf16.vlgmr.msra.gmra.mrb[4].mxu1 %vm281_vm1, %v294_v33 }
 0x39b   :  { %694 = vmatpush3.bf16.msra.mxu1 %v755_v32  ;;  %709 = vmatprep.mubr.msk.bf16.mxu1 %vm1020_vm0, %v1019_v0 }
 0x39c   :  { %695 = vmatprep.subr.bf16.mxu1 %v1019_v0 }
 0x39f   :  { %696 = vmatpush3.bf16.msra.mxu1 %v756_v34 }
 0x3a0   :  { %697 = vmatprep.subr.bf16.mxu1 %v1019_v0 }
 0x3a3   :  { %698 = vmatpush3.bf16.msra.mxu1 %v757_v35 }
 0x3a4   :  { %699 = vmatprep.subr.bf16.mxu1 %v1019_v0 }
 0x3a7   :  { %700 = vmatpush3.bf16.msra.mxu1 %v758_v36 }
 0x3a8   :  { %701 = vmatprep.subr.bf16.mxu1 %v1019_v0 }
 0x3ab   :  { %702 = vmatpush3.bf16.msra.mxu1 %v759_v37 }
 0x3ac   :  { %703 = vmatprep.subr.bf16.mxu1 %v1019_v0 }
 0x3af   :  { %704 = vmatpush3.bf16.msra.mxu1 %v760_v38 }
 0x3b0   :  { %705 = vmatprep.subr.bf16.mxu1 %v1019_v0 }
 0x3b3   :  { %706 = vmatpush3.bf16.msra.mxu1 %v761_v39 }
 0x3b4   :  { %707 = vmatprep.subr.bf16.mxu1 %v1019_v0 }
 0x3b7   :  { %708 = vmatpush3.bf16.msra.mxu1 %v762_v40 }
 0x46d   :  { %v337_v47 = vpop.f32.mrb[4].mxu1 }
 0x46e   :  { %v338_v48 = vadd.f32 %v337_v47, %v1191_v10  ;;  %v691_v49 = vpop.f32.mrb[5].mxu1 }
 0x46f   :  { %v340_v50 = vpop.f32.mrb[6].mxu1 }
 0x470   :  { %v343_v51 = vpack.c.bf16 %v338_v48, %v338_v48  ;;  %v692_v52 = vpop.f32.mrb[7].mxu1 }
 0x472   :  { %710 = vmatmul.mubr.bf16.vlgmr.msra.gmra.mrb[8].mxu1 %v343_v51 }
 0x545   :  { %v449_v56 = vpop.f32.mrb[8].mxu1 }
 0x546   :  { %v450_v57 = vadd.f32 %v612_v55, %v449_v56  ;;  %v711_v58 = vpop.f32.mrb[9].mxu1 }
 0x547   :  { %v452_v59 = vpop.f32.mrb[10].mxu1 }
 0x548   :  { %v455_v60 = vmax.f32 %v450_v57, 0.0  ;;  %v712_v61 = vpop.f32.mrb[11].mxu1 }
 0x54a   :  { %v456_v62 = vpack.c.bf16 %v455_v60, %v455_v60 }
 0x54c   :  { %730 = vmatmul.mubr.bf16.vlgmr.msra.gmra.mrb[4].mxu0 %v456_v62 }
 0x54d   :  { %962 = shalt.err (!%p959_p12)
}
 0x54e   :  { %s963_s17 = scalar_lea.hbm %s1256_s9, 128 }
 0x54f   :  { %p964_p13 = scmp.ne.s32.totalorder %s1256_s9, %s963_s17  ;;  %p967_p0 = scmp.lt.u32.totalorder %s963_s17, %s1256_s9 }
 0x551   :  { %p969_p1 = pnand %p967_p0, %p964_p13 }
 0x553   :  { %972 = shalt.err (!%p969_p1)
}
 0x554   :  { %589 = dma.vmem_to_hbm [thread:$0]  %s587_s13, 128, %s1256_s9, [#allocation18]   ;;  %v621_v63 = vld [vmem:[#allocation14] ss:$0 sm:$0xff] }
 0x555   :  { %s1022_s3 = smov [#allocation16]  }
 0x556   :  { %s576_s24 = sshll.u32 %s1022_s3, 4  ;;  %s577_s24 = int_to_ptr.vmem [resolvable:$true] %s576_s24 }
 0x557   :  { %s973_s4 = scalar_lea.vmem %s577_s24, 128  ;;  %p978_p3 = scmp.lt.s32.totalorder %s577_s24, %s577_s24 }
 0x558   :  { %p974_p2 = scmp.ne.s32.totalorder %s577_s24, %s973_s4  ;;  %p979_p4 = scmp.lt.s32.totalorder %s973_s4, %s973_s4 }
 0x55a   :  { %p980_p5 = por %p979_p4, %p978_p3 }
 0x55c   :  { %p981_p6 = pnand %p980_p5, %p974_p2 }
 0x61f   :  { %v562_v0 = vpop.f32.mrb[4].mxu0 }
 0x620   :  { %v563_v1 = vadd.f32 %v621_v63, %v562_v0  ;;  %v731_v2 = vpop.f32.mrb[5].mxu0 }
 0x621   :  { %v565_v3 = vpop.f32.mrb[6].mxu0 }
 0x622   :  { %v568_v4 = vadd.f32 %v563_v1, %v338_v48  ;;  %v732_v5 = vpop.f32.mrb[7].mxu0 }
 0x624   :  { %569 = vst [vmem:[#allocation16] sm:$0xff] %v568_v4 }
 0x625   :  { %984 = shalt.err (!%p981_p6)
}
 0x626   :  { %s985_s28 = scalar_lea.hbm %s1255_s8, 128 }
 0x627   :  { %p986_p7 = scmp.ne.s32.totalorder %s1255_s8, %s985_s28  ;;  %p989_p8 = scmp.lt.u32.totalorder %s985_s28, %s1255_s8 }
 0x629   :  { %p991_p9 = pnand %p989_p8, %p986_p7 }
 0x62b   :  { %994 = shalt.err (!%p991_p9)
}
 0x62c   :  { %579 = dma.vmem_to_hbm [thread:$0]  %s577_s24, 128, %s1255_s8, [#allocation4]  }
 0x62d   :  { %1005 = dma.done.wait [#allocation4], 128  }
 0x62e   :  { %1006 = vsyncadd [#allocation4], 4294967168 }
 0x62f   :  { %1007 = dma.done.wait [#allocation18], 128  }
 0x630   :  { %1008 = vsyncadd [#allocation18], 4294967168 }
 0x631   :  { %596 = vsyncpa [#allocation3], 1 }
 0x632   :  { %597 = vsyncpa [#allocation6], 1 }
 0x633   :  { %598 = vsyncpa [#allocation9], 1 }
 0x634   :  { %599 = vsyncpa [#allocation12], 1 }
 0x635   :  { %600 = vsyncpa [#allocation15], 1 }
 0x636   :  { %601 = vsyncpa [#allocation4], 1 }
 0x637   :  { %602 = vsyncpa [#allocation18], 1 }

// kernel: tpu_custom_call.1
= control target key start
LH: loop header
LB: loop body
LE: loop exit
PB: predicated region body
PF: predicated region fallthrough
CT: control target
= control target key end

     0   :  { %15 = vsyncpa [#allocation3], 0  ;;  %s1247_s0 = inlined_call_operand.hbm [shape: f32[8,128], index: 0, kind: input, shape index: {}]   ;;  %s1248_s1 = inlined_call_operand.hbm [shape: bf16[128,128], index: 1, kind: input, shape index: {}]   ;;  %s1249_s2 = inlined_call_operand.hbm [shape: bf16[8,128], index: 2, kind: input, shape index: {}]   ;;  %s1250_s3 = inlined_call_operand.hbm [shape: bf16[8,128], index: 3, kind: input, shape index: {}]   ;;  %s1251_s4 = inlined_call_operand.hbm [shape: bf16[128,128], index: 4, kind: input, shape index: {}]   ;;  %s1252_s5 = inlined_call_operand.hbm [shape: f32[1,128], index: 5, kind: input, shape index: {}]   ;;  %s1253_s6 = inlined_call_operand.hbm [shape: bf16[128,128], index: 6, kind: input, shape index: {}]   ;;  %s1254_s7 = inlined_call_operand.hbm [shape: f32[1,128], index: 7, kind: input, shape index: {}]   ;;  %s1255_s8 = inlined_call_operand.hbm [shape: f32[8,128], index: 8, kind: output, shape index: {0}]   ;;  %s1256_s9 = inlined_call_operand.hbm [shape: f32[8,8], index: 9, kind: output, shape index: {1}]  }
   0x1   :  { %16 = vsyncpa [#allocation6], 0 }
   0x2   :  { %17 = vsyncpa [#allocation9], 0 }
   0x3   :  { %18 = vsyncpa [#allocation12], 0 }
   0x4   :  { %19 = vsyncpa [#allocation15], 0 }
   0x5   :  { %20 = vsyncpa [#allocation4], 0 }
   0x6   :  { %21 = vsyncpa [#allocation18], 0  ;;  %s1009_s30 = smov [#allocation5]   ;;  %s775_s13 = scalar_lea.hbm %s1248_s1, 1024 }
   0x7   :  { %s37_s10 = sshll.u32 %s1009_s30, 4  ;;  %p776_p0 = scmp.ne.s32.totalorder %s1248_s1, %s775_s13  ;;  %s38_s10 = int_to_ptr.vmem [resolvable:$true] %s37_s10 }
   0x8   :  { %p779_p1 = scmp.lt.u32.totalorder %s775_s13, %s1248_s1 }
   0xa   :  { %p781_p2 = pnand %p779_p1, %p776_p0 }
   0xc   :  { %784 = shalt.err (!%p781_p2)
}
   0xd   :  { %s785_s18 = scalar_lea.vmem %s38_s10, 1024  ;;  %p790_p4 = scmp.lt.s32.totalorder %s38_s10, %s38_s10 }
   0xe   :  { %p786_p3 = scmp.ne.s32.totalorder %s38_s10, %s785_s18  ;;  %p791_p5 = scmp.lt.s32.totalorder %s785_s18, %s785_s18 }
  0x10   :  { %p792_p6 = por %p791_p5, %p790_p4 }
  0x12   :  { %p793_p7 = pnand %p792_p6, %p786_p3 }
  0x14   :  { %796 = shalt.err (!%p793_p7)
}
  0x15   :  { %s1010_s19 = smov 64   ;;  %s1011_s20 = smov 4  }
  0x16   :  { %43 = dma.hbm_to_vmem [thread:$0]  %s1248_s1, 1024, %s38_s10, [#allocation6], %s1010_s19, %s1010_s19, %s1011_s20  }
  0x17   :  { %s1012_s23 = smov [#allocation8]   ;;  %s1013_s25 = smov [#allocation11]  }
  0x18   :  { %s60_s24 = sshll.u32 %s1012_s23, 4  ;;  %s82_s26 = sshll.u32 %s1013_s25, 4  ;;  %s61_s24 = int_to_ptr.vmem [resolvable:$true] %s60_s24  ;;  %s83_s26 = int_to_ptr.vmem [resolvable:$true] %s82_s26 }
  0x19   :  { %s797_s29 = scalar_lea.hbm %s1250_s3, 64 }
  0x1a   :  { %p798_p8 = scmp.ne.s32.totalorder %s1250_s3, %s797_s29  ;;  %p801_p9 = scmp.lt.u32.totalorder %s797_s29, %s1250_s3 }
  0x1c   :  { %p803_p10 = pnand %p801_p9, %p798_p8 }
  0x1e   :  { %806 = shalt.err (!%p803_p10)
}
  0x1f   :  { %s807_s1 = scalar_lea.vmem %s61_s24, 64  ;;  %p812_p12 = scmp.lt.s32.totalorder %s61_s24, %s61_s24 }
  0x20   :  { %p808_p11 = scmp.ne.s32.totalorder %s61_s24, %s807_s1  ;;  %p813_p13 = scmp.lt.s32.totalorder %s807_s1, %s807_s1 }
  0x22   :  { %p814_p0 = por %p813_p13, %p812_p12 }
  0x24   :  { %p815_p1 = pnand %p814_p0, %p808_p11 }
  0x26   :  { %818 = shalt.err (!%p815_p1)
}
  0x27   :  { %63 = dma.hbm_to_vmem [thread:$0]  %s1250_s3, 64, %s61_s24, [#allocation9]  }
  0x28   :  { %s819_s17 = scalar_lea.hbm %s1252_s5, 16 }
  0x29   :  { %p820_p2 = scmp.ne.s32.totalorder %s1252_s5, %s819_s17  ;;  %p823_p3 = scmp.lt.u32.totalorder %s819_s17, %s1252_s5 }
  0x2b   :  { %p825_p4 = pnand %p823_p3, %p820_p2 }
  0x2d   :  { %828 = shalt.err (!%p825_p4)
}
  0x2e   :  { %s829_s25 = scalar_lea.vmem %s83_s26, 16  ;;  %s833_s27 = scalar_lea.vmem %s83_s26, 32 }
  0x2f   :  { %p830_p5 = scmp.ne.s32.totalorder %s83_s26, %s829_s25  ;;  %p834_p6 = scmp.lt.s32.totalorder %s83_s26, %s83_s26 }
  0x30   :  { %p835_p7 = scmp.lt.s32.totalorder %s833_s27, %s829_s25 }
  0x32   :  { %p836_p8 = por %p835_p7, %p834_p6 }
  0x34   :  { %p837_p9 = pnand %p836_p8, %p830_p5 }
  0x36   :  { %840 = shalt.err (!%p837_p9)
}
  0x37   :  { %85 = dma.hbm_to_vmem [thread:$0]  %s1252_s5, 16, %s83_s26, [#allocation12]  }
  0x38   :  { %s1014_s28 = smov [#allocation2]   ;;  %s1015_s30 = smov [#allocation7]  }
  0x39   :  { %s28_s29 = sshll.u32 %s1014_s28, 4  ;;  %s50_s11 = sshll.u32 %s1015_s30, 4  ;;  %s29_s29 = int_to_ptr.vmem [resolvable:$true] %s28_s29  ;;  %s51_s11 = int_to_ptr.vmem [resolvable:$true] %s50_s11 }
  0x3a   :  { %s841_s1 = scalar_lea.hbm %s1247_s0, 128 }
  0x3b   :  { %p842_p10 = scmp.ne.s32.totalorder %s1247_s0, %s841_s1  ;;  %p845_p11 = scmp.lt.u32.totalorder %s841_s1, %s1247_s0 }
  0x3d   :  { %p847_p12 = pnand %p845_p11, %p842_p10 }
  0x3f   :  { %850 = shalt.err (!%p847_p12)
}
  0x40   :  { %s851_s5 = scalar_lea.vmem %s29_s29, 128  ;;  %p856_p0 = scmp.lt.s32.totalorder %s29_s29, %s29_s29 }
  0x41   :  { %p852_p13 = scmp.ne.s32.totalorder %s29_s29, %s851_s5  ;;  %p857_p1 = scmp.lt.s32.totalorder %s851_s5, %s851_s5 }
  0x43   :  { %p858_p2 = por %p857_p1, %p856_p0 }
  0x45   :  { %p859_p3 = pnand %p858_p2, %p852_p13 }
  0x47   :  { %862 = shalt.err (!%p859_p3)
}
  0x48   :  { %31 = dma.hbm_to_vmem [thread:$0]  %s1247_s0, 128, %s29_s29, [#allocation3]  }
  0x49   :  { %s863_s22 = scalar_lea.hbm %s1249_s2, 64 }
  0x4a   :  { %p864_p4 = scmp.ne.s32.totalorder %s1249_s2, %s863_s22  ;;  %p867_p5 = scmp.lt.u32.totalorder %s863_s22, %s1249_s2 }
  0x4c   :  { %p869_p6 = pnand %p867_p5, %p864_p4 }
  0x4e   :  { %872 = shalt.err (!%p869_p6)
}
  0x4f   :  { %s873_s24 = scalar_lea.vmem %s51_s11, 64  ;;  %p878_p8 = scmp.lt.s32.totalorder %s51_s11, %s51_s11 }
  0x50   :  { %p874_p7 = scmp.ne.s32.totalorder %s51_s11, %s873_s24  ;;  %p879_p9 = scmp.lt.s32.totalorder %s873_s24, %s873_s24 }
  0x52   :  { %p880_p10 = por %p879_p9, %p878_p8 }
  0x54   :  { %p881_p11 = pnand %p880_p10, %p874_p7 }
  0x56   :  { %884 = shalt.err (!%p881_p11)
}
  0x57   :  { %53 = dma.hbm_to_vmem [thread:$0]  %s1249_s2, 64, %s51_s11, [#allocation6]  }
  0x58   :  { %s1016_s29 = smov [#allocation10]   ;;  %s1017_s12 = smov [#allocation13]  }
  0x59   :  { %s69_s30 = sshll.u32 %s1016_s29, 4  ;;  %s91_s13 = sshll.u32 %s1017_s12, 4  ;;  %s70_s30 = int_to_ptr.vmem [resolvable:$true] %s69_s30  ;;  %s92_s13 = int_to_ptr.vmem [resolvable:$true] %s91_s13 }
  0x5a   :  { %s885_s14 = scalar_lea.hbm %s1251_s4, 1024 }
  0x5b   :  { %p886_p12 = scmp.ne.s32.totalorder %s1251_s4, %s885_s14  ;;  %p889_p13 = scmp.lt.u32.totalorder %s885_s14, %s1251_s4 }
  0x5d   :  { %p891_p0 = pnand %p889_p13, %p886_p12 }
  0x5f   :  { %894 = shalt.err (!%p891_p0)
}
  0x60   :  { %s895_s2 = scalar_lea.vmem %s70_s30, 1024  ;;  %p900_p2 = scmp.lt.s32.totalorder %s70_s30, %s70_s30 }
  0x61   :  { %p896_p1 = scmp.ne.s32.totalorder %s70_s30, %s895_s2  ;;  %p901_p3 = scmp.lt.s32.totalorder %s895_s2, %s895_s2 }
  0x63   :  { %p902_p4 = por %p901_p3, %p900_p2 }
  0x65   :  { %p903_p5 = pnand %p902_p4, %p896_p1 }
  0x67   :  { %906 = shalt.err (!%p903_p5)
}
  0x68   :  { %75 = dma.hbm_to_vmem [thread:$0]  %s1251_s4, 1024, %s70_s30, [#allocation9], %s1010_s19, %s1010_s19, %s1011_s20  }
  0x69   :  { %s907_s22 = scalar_lea.hbm %s1253_s6, 1024 }
  0x6a   :  { %p908_p6 = scmp.ne.s32.totalorder %s1253_s6, %s907_s22  ;;  %p911_p7 = scmp.lt.u32.totalorder %s907_s22, %s1253_s6 }
  0x6c   :  { %p913_p8 = pnand %p911_p7, %p908_p6 }
  0x6e   :  { %916 = shalt.err (!%p913_p8)
}
  0x6f   :  { %s917_s24 = scalar_lea.vmem %s92_s13, 1024  ;;  %p922_p10 = scmp.lt.s32.totalorder %s92_s13, %s92_s13 }
  0x70   :  { %p918_p9 = scmp.ne.s32.totalorder %s92_s13, %s917_s24  ;;  %p923_p11 = scmp.lt.s32.totalorder %s917_s24, %s917_s24 }
  0x72   :  { %p924_p12 = por %p923_p11, %p922_p10 }
  0x74   :  { %p925_p13 = pnand %p924_p12, %p918_p9 }
  0x76   :  { %928 = shalt.err (!%p925_p13)
}
  0x77   :  { %97 = dma.hbm_to_vmem [thread:$0]  %s1253_s6, 1024, %s92_s13, [#allocation12], %s1010_s19, %s1010_s19, %s1011_s20  }
  0x78   :  { %s1018_s28 = smov [#allocation14]   ;;  %s929_s1 = scalar_lea.hbm %s1254_s7, 16 }
  0x79   :  { %s104_s29 = sshll.u32 %s1018_s28, 4  ;;  %p930_p0 = scmp.ne.s32.totalorder %s1254_s7, %s929_s1  ;;  %s105_s29 = int_to_ptr.vmem [resolvable:$true] %s104_s29 }
  0x7a   :  { %p933_p1 = scmp.lt.u32.totalorder %s929_s1, %s1254_s7 }
  0x7c   :  { %p935_p2 = pnand %p933_p1, %p930_p0 }
  0x7e   :  { %938 = shalt.err (!%p935_p2)
}
  0x7f   :  { %s939_s5 = scalar_lea.vmem %s105_s29, 16  ;;  %s943_s6 = scalar_lea.vmem %s105_s29, 32 }
  0x80   :  { %p940_p3 = scmp.ne.s32.totalorder %s105_s29, %s939_s5  ;;  %p944_p4 = scmp.lt.s32.totalorder %s105_s29, %s105_s29 }
  0x81   :  { %p945_p5 = scmp.lt.s32.totalorder %s943_s6, %s939_s5 }
  0x83   :  { %p946_p6 = por %p945_p5, %p944_p4 }
  0x85   :  { %p947_p7 = pnand %p946_p6, %p940_p3 }
  0x87   :  { %950 = shalt.err (!%p947_p7)
}
  0x88   :  { %107 = dma.hbm_to_vmem [thread:$0]  %s1254_s7, 16, %s105_s29, [#allocation15]  }
  0x89   :  { %995 = dma.done.wait [#allocation3], 128  }
  0x8a   :  { %996 = vsyncadd [#allocation3], 4294967168 }
  0x8b   :  { %997 = dma.done.wait [#allocation6], 1088  }
  0x8c   :  { %998 = vsyncadd [#allocation6], 4294966208 }
  0x8d   :  { %999 = dma.done.wait [#allocation9], 1088  }
  0x8e   :  { %1000 = vsyncadd [#allocation9], 4294966208 }
  0x8f   :  { %1001 = dma.done.wait [#allocation12], 1040  }
  0x90   :  { %1002 = vsyncadd [#allocation12], 4294966256 }
  0x91   :  { %1003 = dma.done.wait [#allocation15], 16  }
  0x92   :  { %1004 = vsyncadd [#allocation15], 4294967280  ;;  %v1019_v0 = vmov 0.0   ;;  %vm1020_vm0 = vmmov 0   ;;  %v747_v1 = vld [vmem:[#allocation5] sm:$0xff]   ;;  %v748_v2 = vld [vmem:[#allocation5 + $0x8] sm:$0xff]  }
  0x93   :  { %661 = vmatprep.subr.bf16.mxu0 %v1019_v0  ;;  %677 = vmatprep.mubr.msk.bf16.mxu0 %vm1020_vm0, %v1019_v0  ;;  %v749_v3 = vld [vmem:[#allocation5 + $0x10] sm:$0xff]   ;;  %v750_v4 = vld [vmem:[#allocation5 + $0x18] sm:$0xff]   ;;  %v240_v5 = vld [vmem:[#allocation7] sm:$0xf]  ;;  %vm281_vm1 = vcmask 64512   ;;  %vm299_vm2 = vcmask 1043456  }
  0x94   :  { %681 = vmatprep.subr.bf16.mxu1 %v1019_v0  ;;  %683 = vmatprep.mubr.msk.bf16.mxu1 %vm1020_vm0, %v1019_v0  ;;  %v751_v6 = vld [vmem:[#allocation5 + $0x20] sm:$0xff]   ;;  %v752_v7 = vld [vmem:[#allocation5 + $0x28] sm:$0xff]   ;;  %v753_v8 = vld [vmem:[#allocation5 + $0x30] sm:$0xff]   ;;  %s1021_s7 = smov [#allocation17]  }
  0x95   :  { %662 = vmatpush3.bf16.msra.mxu0 %v747_v1  ;;  %682 = vmatpush3.bf16.xpose.msra.mxu1 %v240_v5  ;;  %v754_v9 = vld [vmem:[#allocation5 + $0x38] sm:$0xff]   ;;  %v295_v27 = vld [vmem:[#allocation8] sm:$0xf]  ;;  %v755_v32 = vld [vmem:[#allocation10] sm:$0xff]   ;;  %s586_s13 = sshll.u32 %s1021_s7, 4  ;;  %s587_s13 = int_to_ptr.vmem [resolvable:$true] %s586_s13 }
  0x96   :  { %663 = vmatprep.subr.bf16.mxu0 %v1019_v0  ;;  %687 = vmatprep.subr.bf16.mxu1 %v1019_v0  ;;  %v1191_v10 = vld [vmem:[#allocation2] sm:$0xff]  ;;  %v301_v28 = vsel %vm299_vm2, %v295_v27, 0  ;;  %v756_v34 = vld [vmem:[#allocation10 + $0x8] sm:$0xff]   ;;  %v758_v36 = vld [vmem:[#allocation10 + $0x18] sm:$0xff]   ;;  %s951_s26 = scalar_lea.vmem %s587_s13, 128  ;;  %p956_p9 = scmp.lt.s32.totalorder %s587_s13, %s587_s13 }
  0x97   :  { %v134_v11 = vpack.c.bf16 %v1191_v10, %v1191_v10  ;;  %v757_v35 = vld [vmem:[#allocation10 + $0x10] sm:$0xff]   ;;  %v759_v37 = vld [vmem:[#allocation10 + $0x20] sm:$0xff]   ;;  %v760_v38 = vld [vmem:[#allocation10 + $0x28] sm:$0xff]   ;;  %p952_p8 = scmp.ne.s32.totalorder %s587_s13, %s951_s26  ;;  %p957_p10 = scmp.lt.s32.totalorder %s951_s26, %s951_s26 }
  0x98   :  { %v761_v39 = vld [vmem:[#allocation10 + $0x30] sm:$0xff]   ;;  %v762_v40 = vld [vmem:[#allocation10 + $0x38] sm:$0xff]   ;;  %v763_v41 = vld [vmem:[#allocation13] sm:$0xff]  }
  0x99   :  { %664 = vmatpush3.bf16.msra.mxu0 %v748_v2  ;;  %v764_v42 = vld [vmem:[#allocation13 + $0x8] sm:$0xff]   ;;  %v765_v43 = vld [vmem:[#allocation13 + $0x10] sm:$0xff]   ;;  %v766_v44 = vld [vmem:[#allocation13 + $0x18] sm:$0xff]   ;;  %p958_p11 = por %p957_p10, %p956_p9 }
  0x9a   :  { %665 = vmatprep.subr.bf16.mxu0 %v1019_v0  ;;  %v767_v45 = vld [vmem:[#allocation13 + $0x20] sm:$0xff]   ;;  %v768_v46 = vld [vmem:[#allocation13 + $0x28] sm:$0xff]   ;;  %v769_v53 = vld [vmem:[#allocation13 + $0x30] sm:$0xff]  }
  0x9b   :  { %v770_v54 = vld [vmem:[#allocation13 + $0x38] sm:$0xff]   ;;  %p959_p12 = pnand %p958_p11, %p952_p8 }
  0x9c   :  { %v612_v55 = vld [vmem:[#allocation11] ss:$0 sm:$0xff] }
  0x9d   :  { %666 = vmatpush3.bf16.msra.mxu0 %v749_v3 }
  0x9e   :  { %667 = vmatprep.subr.bf16.mxu0 %v1019_v0 }
  0xa1   :  { %668 = vmatpush3.bf16.msra.mxu0 %v750_v4 }
  0xa2   :  { %669 = vmatprep.subr.bf16.mxu0 %v1019_v0 }
  0xa5   :  { %670 = vmatpush3.bf16.msra.mxu0 %v751_v6 }
  0xa6   :  { %671 = vmatprep.subr.bf16.mxu0 %v1019_v0 }
  0xa9   :  { %672 = vmatpush3.bf16.msra.mxu0 %v752_v7 }
  0xaa   :  { %673 = vmatprep.subr.bf16.mxu0 %v1019_v0 }
  0xad   :  { %674 = vmatpush3.bf16.msra.mxu0 %v753_v8 }
  0xae   :  { %675 = vmatprep.subr.bf16.mxu0 %v1019_v0 }
  0xb1   :  { %676 = vmatpush3.bf16.msra.mxu0 %v754_v9 }
  0xb2   :  { %713 = vmatprep.subr.bf16.mxu0 %v1019_v0 }
  0xb4   :  { %678 = vmatmul.mubr.bf16.vlgmr.msra.gmra.mrb[0].mxu0 %v134_v11 }
  0xb5   :  { %729 = vmatprep.mubr.msk.bf16.mxu0 %vm1020_vm0, %v1019_v0  ;;  %714 = vmatpush3.bf16.msra.mxu0 %v763_v41 }
  0xb6   :  { %715 = vmatprep.subr.bf16.mxu0 %v1019_v0 }
  0xb9   :  { %716 = vmatpush3.bf16.msra.mxu0 %v764_v42 }
  0xba   :  { %717 = vmatprep.subr.bf16.mxu0 %v1019_v0 }
  0xbd   :  { %718 = vmatpush3.bf16.msra.mxu0 %v765_v43 }
  0xbe   :  { %719 = vmatprep.subr.bf16.mxu0 %v1019_v0 }
  0xc1   :  { %720 = vmatpush3.bf16.msra.mxu0 %v766_v44 }
  0xc2   :  { %721 = vmatprep.subr.bf16.mxu0 %v1019_v0 }
  0xc5   :  { %722 = vmatpush3.bf16.msra.mxu0 %v767_v45 }
  0xc6   :  { %723 = vmatprep.subr.bf16.mxu0 %v1019_v0 }
  0xc9   :  { %724 = vmatpush3.bf16.msra.mxu0 %v768_v46 }
  0xca   :  { %725 = vmatprep.subr.bf16.mxu0 %v1019_v0 }
  0xcd   :  { %726 = vmatpush3.bf16.msra.mxu0 %v769_v53 }
  0xce   :  { %727 = vmatprep.subr.bf16.mxu0 %v1019_v0 }
  0xd1   :  { %728 = vmatpush3.bf16.msra.mxu0 %v770_v54 }
 0x187   :  { %v233_v12 = vpop.f32.mrb[0].mxu0 }
 0x188   :  { %v239_v13 = vpack.c.bf16 %v233_v12, %v233_v12  ;;  %v679_v14 = vpop.f32.mrb[1].mxu0 }
 0x189   :  { %v236_v15 = vpop.f32.mrb[2].mxu0 }
 0x18a   :  { %v680_v16 = vpop.f32.mrb[3].mxu0  ;;  %684 = vmatmul.mubr.bf16.vlgmr.msra.gmra.mrb[0].mxu1 %v239_v13 }
 0x18b   :  { %689 = vmatprep.mubr.msk.bf16.mxu1 %vm1020_vm0, %v1019_v0  ;;  %688 = vmatpush3.bf16.msra.mxu1 %v301_v28 }
 0x18c   :  { %693 = vmatprep.subr.bf16.mxu1 %v1019_v0 }
 0x25d   :  { %v275_v17 = vpop.f32.mrb[0].mxu1 }
 0x25e   :  { %v685_v18 = vpop.f32.mrb[1].mxu1  ;;  %v282_v19 = vsel %vm281_vm1, %v275_v17, -inf }
 0x25f   :  { %283 = vmax.xlane.f32.xlu0 %v282_v19  ;;  %v278_v20 = vpop.f32.mrb[2].mxu1 }
 0x260   :  { %v686_v21 = vpop.f32.mrb[3].mxu1 }
 0x2ec   :  { %v284_v22 = vpop.xlane.xlu0 %283 }
 0x2ed   :  { %v285_v23 = vsub.f32 %v275_v17, %v284_v22 }
 0x2ef   :  { %v286_v24 = vmul.f32 1.442695, %v285_v23 }
 0x2f1   :  { %771 = vpow2.f32 %v286_v24 }
 0x2fb   :  { %v772_v25 = vpop.eup %771 }
 0x2fc   :  { %v288_v26 = vsel %vm281_vm1, %v772_v25, 0.0 }
 0x2fd   :  { %289 = vadd.xlane.f32.xlu0 %v288_v26 }
 0x38a   :  { %v290_v29 = vpop.xlane.xlu0 %289 }
 0x38b   :  { %773 = vrcp.f32 %v290_v29 }
 0x395   :  { %v774_v30 = vpop.eup %773 }
 0x396   :  { %v292_v31 = vmul.f32 %v774_v30, %v772_v25 }
 0x398   :  { %293 = vst.msk [vmem:[#allocation17] sm:$0xff] %vm281_vm1, %v292_v31  ;;  %v294_v33 = vpack.c.bf16 %v292_v31, %v292_v31 }
 0x39a   :  { %690 = vmatmul.mubr.msk.bf16.vlgmr.msra.gmra.mrb[4].mxu1 %vm281_vm1, %v294_v33 }
 0x39b   :  { %694 = vmatpush3.bf16.msra.mxu1 %v755_v32  ;;  %709 = vmatprep.mubr.msk.bf16.mxu1 %vm1020_vm0, %v1019_v0 }
 0x39c   :  { %695 = vmatprep.subr.bf16.mxu1 %v1019_v0 }
 0x39f   :  { %696 = vmatpush3.bf16.msra.mxu1 %v756_v34 }
 0x3a0   :  { %697 = vmatprep.subr.bf16.mxu1 %v1019_v0 }
 0x3a3   :  { %698 = vmatpush3.bf16.msra.mxu1 %v757_v35 }
 0x3a4   :  { %699 = vmatprep.subr.bf16.mxu1 %v1019_v0 }
 0x3a7   :  { %700 = vmatpush3.bf16.msra.mxu1 %v758_v36 }
 0x3a8   :  { %701 = vmatprep.subr.bf16.mxu1 %v1019_v0 }
 0x3ab   :  { %702 = vmatpush3.bf16.msra.mxu1 %v759_v37 }
 0x3ac   :  { %703 = vmatprep.subr.bf16.mxu1 %v1019_v0 }
 0x3af   :  { %704 = vmatpush3.bf16.msra.mxu1 %v760_v38 }
 0x3b0   :  { %705 = vmatprep.subr.bf16.mxu1 %v1019_v0 }
 0x3b3   :  { %706 = vmatpush3.bf16.msra.mxu1 %v761_v39 }
 0x3b4   :  { %707 = vmatprep.subr.bf16.mxu1 %v1019_v0 }
 0x3b7   :  { %708 = vmatpush3.bf16.msra.mxu1 %v762_v40 }
 0x46d   :  { %v337_v47 = vpop.f32.mrb[4].mxu1 }
 0x46e   :  { %v338_v48 = vadd.f32 %v337_v47, %v1191_v10  ;;  %v691_v49 = vpop.f32.mrb[5].mxu1 }
 0x46f   :  { %v340_v50 = vpop.f32.mrb[6].mxu1 }
 0x470   :  { %v343_v51 = vpack.c.bf16 %v338_v48, %v338_v48  ;;  %v692_v52 = vpop.f32.mrb[7].mxu1 }
 0x472   :  { %710 = vmatmul.mubr.bf16.vlgmr.msra.gmra.mrb[8].mxu1 %v343_v51 }
 0x545   :  { %v449_v56 = vpop.f32.mrb[8].mxu1 }
 0x546   :  { %v450_v57 = vadd.f32 %v612_v55, %v449_v56  ;;  %v711_v58 = vpop.f32.mrb[9].mxu1 }
 0x547   :  { %v452_v59 = vpop.f32.mrb[10].mxu1 }
 0x548   :  { %v455_v60 = vmax.f32 %v450_v57, 0.0  ;;  %v712_v61 = vpop.f32.mrb[11].mxu1 }
 0x54a   :  { %v456_v62 = vpack.c.bf16 %v455_v60, %v455_v60 }
 0x54c   :  { %730 = vmatmul.mubr.bf16.vlgmr.msra.gmra.mrb[4].mxu0 %v456_v62 }
 0x54d   :  { %962 = shalt.err (!%p959_p12)
}
 0x54e   :  { %s963_s17 = scalar_lea.hbm %s1256_s9, 128 }
 0x54f   :  { %p964_p13 = scmp.ne.s32.totalorder %s1256_s9, %s963_s17  ;;  %p967_p0 = scmp.lt.u32.totalorder %s963_s17, %s1256_s9 }
 0x551   :  { %p969_p1 = pnand %p967_p0, %p964_p13 }
 0x553   :  { %972 = shalt.err (!%p969_p1)
}
 0x554   :  { %589 = dma.vmem_to_hbm [thread:$0]  %s587_s13, 128, %s1256_s9, [#allocation18]   ;;  %v621_v63 = vld [vmem:[#allocation14] ss:$0 sm:$0xff] }
 0x555   :  { %s1022_s3 = smov [#allocation16]  }
 0x556   :  { %s576_s24 = sshll.u32 %s1022_s3, 4  ;;  %s577_s24 = int_to_ptr.vmem [resolvable:$true] %s576_s24 }
 0x557   :  { %s973_s4 = scalar_lea.vmem %s577_s24, 128  ;;  %p978_p3 = scmp.lt.s32.totalorder %s577_s24, %s577_s24 }
 0x558   :  { %p974_p2 = scmp.ne.s32.totalorder %s577_s24, %s973_s4  ;;  %p979_p4 = scmp.lt.s32.totalorder %s973_s4, %s973_s4 }
 0x55a   :  { %p980_p5 = por %p979_p4, %p978_p3 }
 0x55c   :  { %p981_p6 = pnand %p980_p5, %p974_p2 }
 0x61f   :  { %v562_v0 = vpop.f32.mrb[4].mxu0 }
 0x620   :  { %v563_v1 = vadd.f32 %v621_v63, %v562_v0  ;;  %v731_v2 = vpop.f32.mrb[5].mxu0 }
 0x621   :  { %v565_v3 = vpop.f32.mrb[6].mxu0 }
 0x622   :  { %v568_v4 = vadd.f32 %v563_v1, %v338_v48  ;;  %v732_v5 = vpop.f32.mrb[7].mxu0 }
 0x624   :  { %569 = vst [vmem:[#allocation16] sm:$0xff] %v568_v4 }
 0x625   :  { %984 = shalt.err (!%p981_p6)
}
 0x626   :  { %s985_s28 = scalar_lea.hbm %s1255_s8, 128 }
 0x627   :  { %p986_p7 = scmp.ne.s32.totalorder %s1255_s8, %s985_s28  ;;  %p989_p8 = scmp.lt.u32.totalorder %s985_s28, %s1255_s8 }
 0x629   :  { %p991_p9 = pnand %p989_p8, %p986_p7 }
 0x62b   :  { %994 = shalt.err (!%p991_p9)
}
 0x62c   :  { %579 = dma.vmem_to_hbm [thread:$0]  %s577_s24, 128, %s1255_s8, [#allocation4]  }
 0x62d   :  { %1005 = dma.done.wait [#allocation4], 128  }
 0x62e   :  { %1006 = vsyncadd [#allocation4], 4294967168 }
 0x62f   :  { %1007 = dma.done.wait [#allocation18], 128  }
 0x630   :  { %1008 = vsyncadd [#allocation18], 4294967168 }
 0x631   :  { %596 = vsyncpa [#allocation3], 1 }
 0x632   :  { %597 = vsyncpa [#allocation6], 1 }
 0x633   :  { %598 = vsyncpa [#allocation9], 1 }
 0x634   :  { %599 = vsyncpa [#allocation12], 1 }
 0x635   :  { %600 = vsyncpa [#allocation15], 1 }
 0x636   :  { %601 = vsyncpa [#allocation4], 1 }
 0x637   :  { %602 = vsyncpa [#allocation18], 1 }

</bundles_post_ra>
